<compile_context>
chip_gen: v5e
topology: v5e:2x2
jax: 0.10.0
libtpu: 0.0.40
codegen_flags: <defaults>
</compile_context>

<pallas_src>
import math

import jax
import jax.numpy as jnp
from jax.experimental import pallas as pl
from jax.experimental.pallas import tpu as pltpu


# ----------------------------- activations ----------------------------------
_ACTIVATIONS = {
    "relu": lambda h: jnp.maximum(h, 0.0),
    "sigmoid": jax.nn.sigmoid,
    "softmax": lambda h: jax.nn.softmax(h, axis=-1),
}
# TODO(synk): 'prelu' and 'dice' activations need learnable per-feature parameters
#             (and dice needs its own BN stats); not implemented here.


# ------------------------------- kernel --------------------------------------
def _make_mlp_kernel(num_hidden, has_output_layer, act_fn):
    """Builds a fused kernel: refs = (x, [W, b, scale, shift]*num_hidden, [Wo, bo]?, out)."""

    def kernel(*refs):
        x_ref = refs[0]
        o_ref = refs[-1]
        p = refs[1:-1]

        h = x_ref[...].astype(jnp.float32)
        idx = 0
        for _ in range(num_hidden):
            w = p[idx][...]          # (d_in, d_out)   Linear weight
            b = p[idx + 1][...]      # (1, d_out)      Linear bias
            scale = p[idx + 2][...]  # (1, d_out)      BN gamma / sqrt(var + eps)
            shift = p[idx + 3][...]  # (1, d_out)      BN beta - mean * scale
            idx += 4
            h = jnp.dot(h, w, preferred_element_type=jnp.float32)
            h = (h + b) * scale + shift      # Linear bias + inference-mode BatchNorm1d
            h = act_fn(h)
            # Dropout: identity (eval mode / p=0).
            # TODO(synk): training-mode dropout would use pltpu.prng_seed +
            #             pltpu.prng_random_bits to build the mask in-kernel.
        if has_output_layer:
            w = p[idx][...]          # (d_in, 1)
            b = p[idx + 1][...]      # (1, 1)
            h = jnp.dot(h, w, preferred_element_type=jnp.float32) + b
        o_ref[...] = h.astype(o_ref.dtype)

    return kernel


# ------------------------------- wrapper --------------------------------------
def mlp_forward(x, params, *, activation="relu", bn_eps=1e-5, batch_tile=None):
    """JAX/Pallas equivalent of MLP.forward(x) in inference mode."""
    x = jnp.asarray(x, jnp.float32)
    batch, input_dim = x.shape
    hidden = params["hidden"]
    out = params["out"]

    if not hidden and out is None:      # empty nn.Sequential -> identity
        return x

    act_fn = _ACTIVATIONS[activation]

    # Fold BatchNorm (running stats) into a per-feature affine, flatten all params.
    flat = []
    for (W, b, gamma, beta, mean, var) in hidden:
        d_out = W.shape[1]
        scale = gamma * jax.lax.rsqrt(var + bn_eps)
        shift = beta - mean * scale
        flat += [
            W.astype(jnp.float32),
            b.reshape(1, d_out).astype(jnp.float32),
            scale.reshape(1, d_out).astype(jnp.float32),
            shift.reshape(1, d_out).astype(jnp.float32),
        ]
    if out is not None:
        Wo, bo = out
        out_dim = Wo.shape[1]
        flat += [Wo.astype(jnp.float32), bo.reshape(1, out_dim).astype(jnp.float32)]
    else:
        out_dim = hidden[-1][0].shape[1]

    # Pad batch up to a sublane multiple (8) so every block shape is legal.
    padded_batch = max(8, ((batch + 7) // 8) * 8)
    if padded_batch != batch:
        x = jnp.pad(x, ((0, padded_batch - batch), (0, 0)))

    # Batch tiling: one full-batch block for small batches; tile (and let megacore
    # shard the "parallel" axis) only when the batch is large.
    if batch_tile is None:
        batch_tile = padded_batch if padded_batch <= 256 else 256
    if padded_batch % batch_tile != 0:
        batch_tile = padded_batch       # fall back to one full-batch block
    grid = (padded_batch // batch_tile,)

    in_specs = [pl.BlockSpec((batch_tile, input_dim), lambda i: (i, 0))]
    for a in flat:
        # Weights / vectors: full-array blocks, same block index every iteration
        # (kept resident in VMEM, not re-fetched per batch tile).
        in_specs.append(pl.BlockSpec(a.shape, lambda i: (0, 0)))
    out_spec = pl.BlockSpec((batch_tile, out_dim), lambda i: (i, 0))

    kernel = _make_mlp_kernel(len(hidden), out is not None, act_fn)
    y = pl.pallas_call(
        kernel,
        out_shape=jax.ShapeDtypeStruct((padded_batch, out_dim), jnp.float32),
        grid_spec=pltpu.PrefetchScalarGridSpec(
            num_scalar_prefetch=0,
            grid=grid,
            in_specs=in_specs,
            out_specs=out_spec,
        ),
        compiler_params=pltpu.CompilerParams(
            dimension_semantics=("parallel",),
        ),
    )(x, *flat)
    if padded_batch != batch:
        y = y[:batch]
    return y


# --------------------------- params + reference -------------------------------
def init_mlp_params(key, input_dim, dims=None, output_layer=True):
    """Mimics PyTorch default init; BN gets non-trivial (random) running stats."""
    dims = list(dims) if dims else []
    hidden = []
    d_in = input_dim
    for d_out in dims:
        key, kw, kb, kg, kbe, km, kv = jax.random.split(key, 7)
        bound = 1.0 / math.sqrt(d_in)
        W = jax.random.uniform(kw, (d_in, d_out), jnp.float32, -bound, bound)
        b = jax.random.uniform(kb, (d_out,), jnp.float32, -bound, bound)
        gamma = jax.random.uniform(kg, (d_out,), jnp.float32, 0.5, 1.5)
        beta = jax.random.uniform(kbe, (d_out,), jnp.float32, -0.5, 0.5)
        mean = jax.random.uniform(km, (d_out,), jnp.float32, -0.5, 0.5)
        var = jax.random.uniform(kv, (d_out,), jnp.float32, 0.5, 1.5)
        hidden.append((W, b, gamma, beta, mean, var))
        d_in = d_out
    out = None
    if output_layer:
        key, kw, kb = jax.random.split(key, 3)
        bound = 1.0 / math.sqrt(d_in)
        Wo = jax.random.uniform(kw, (d_in, 1), jnp.float32, -bound, bound)
        bo = jax.random.uniform(kb, (1,), jnp.float32, -bound, bound)
        out = (Wo, bo)
    return {"hidden": hidden, "out": out}


def mlp_reference(x, params, *, activation="relu", bn_eps=1e-5):
    """Pure-JAX reference (same inference-mode semantics)."""
    h = jnp.asarray(x, jnp.float32)
    act_fn = _ACTIVATIONS[activation]
    hp = jax.lax.Precision.HIGHEST
    for (W, b, gamma, beta, mean, var) in params["hidden"]:
        h = jnp.dot(h, W, precision=hp) + b
        h = (h - mean) * jax.lax.rsqrt(var + bn_eps) * gamma + beta
        h = act_fn(h)
    if params["out"] is not None:
        Wo, bo = params["out"]
        h = jnp.dot(h, Wo, precision=hp) + bo
    return h


# --------------------------------- main ---------------------------------------
if __name__ == "__main__":
    key = jax.random.PRNGKey(0)
    batch, input_dim = 8, 16
    dims = [32, 16]

    key, kx, kp1, kp2 = jax.random.split(key, 4)
    x = jax.random.normal(kx, (batch, input_dim), jnp.float32)

    # ---- Config 1: hidden layers + output layer, relu  -> (batch, 1) ----------
    params1 = init_mlp_params(kp1, input_dim, dims=dims, output_layer=True)
    y1 = jax.block_until_ready(mlp_forward(x, params1, activation="relu"))
    assert y1.shape == (batch, 1) and y1.dtype == jnp.float32
    r1 = mlp_reference(x, params1, activation="relu")
    err1 = float(jnp.max(jnp.abs(y1 - r1)))
    assert jnp.allclose(y1, r1, rtol=2e-3, atol=2e-3), f"max abs err (config 1): {err1}"

    # ---- Config 2: no output layer, sigmoid -> (batch, dims[-1]) --------------
    params2 = init_mlp_params(kp2, input_dim, dims=[32], output_layer=False)
    y2 = jax.block_until_ready(mlp_forward(x, params2, activation="sigmoid"))
    assert y2.shape == (batch, 32) and y2.dtype == jnp.float32
    r2 = mlp_reference(x, params2, activation="sigmoid")
    err2 = float(jnp.max(jnp.abs(y2 - r2)))
    assert jnp.allclose(y2, r2, rtol=2e-3, atol=2e-3), f"max abs err (config 2): {err2}"

    print("KERNEL_OK")
</pallas_src>

<mosaic_0001>
module attributes {stable_mosaic.version = 11 : i64} {
  func.func @kernel(%arg0: i32, %arg1: memref<8x16xf32, #tpu.memory_space<vmem>>, %arg2: memref<16x32xf32, #tpu.memory_space<vmem>>, %arg3: memref<1x32xf32, #tpu.memory_space<vmem>>, %arg4: memref<1x32xf32, #tpu.memory_space<vmem>>, %arg5: memref<1x32xf32, #tpu.memory_space<vmem>>, %arg6: memref<32x16xf32, #tpu.memory_space<vmem>>, %arg7: memref<1x16xf32, #tpu.memory_space<vmem>>, %arg8: memref<1x16xf32, #tpu.memory_space<vmem>>, %arg9: memref<1x16xf32, #tpu.memory_space<vmem>>, %arg10: memref<16x1xf32, #tpu.memory_space<vmem>>, %arg11: memref<1x1xf32, #tpu.memory_space<vmem>>, %arg12: memref<8x1xf32, #tpu.memory_space<vmem>>) attributes {dimension_semantics = [#tpu.dimension_semantics<parallel>], iteration_bounds = array<i64: 1>, scalar_prefetch = 0 : i64, scratch_operands = 0 : i64, tpu.core_type = #tpu.core_type<tc>, window_params = [{transform_indices = @transform_0, window_bounds = array<i64: 8, 16>}, {pipeline_mode = #tpu.pipeline_mode<synchronous>, transform_indices = @transform_1, window_bounds = array<i64: 16, 32>}, {pipeline_mode = #tpu.pipeline_mode<synchronous>, transform_indices = @transform_2, window_bounds = array<i64: 1, 32>}, {pipeline_mode = #tpu.pipeline_mode<synchronous>, transform_indices = @transform_3, window_bounds = array<i64: 1, 32>}, {pipeline_mode = #tpu.pipeline_mode<synchronous>, transform_indices = @transform_4, window_bounds = array<i64: 1, 32>}, {pipeline_mode = #tpu.pipeline_mode<synchronous>, transform_indices = @transform_5, window_bounds = array<i64: 32, 16>}, {pipeline_mode = #tpu.pipeline_mode<synchronous>, transform_indices = @transform_6, window_bounds = array<i64: 1, 16>}, {pipeline_mode = #tpu.pipeline_mode<synchronous>, transform_indices = @transform_7, window_bounds = array<i64: 1, 16>}, {pipeline_mode = #tpu.pipeline_mode<synchronous>, transform_indices = @transform_8, window_bounds = array<i64: 1, 16>}, {pipeline_mode = #tpu.pipeline_mode<synchronous>, transform_indices = @transform_9, window_bounds = array<i64: 16, 1>}, {pipeline_mode = #tpu.pipeline_mode<synchronous>, transform_indices = @transform_10, window_bounds = array<i64: 1, 1>}, {transform_indices = @transform_11, window_bounds = array<i64: 8, 1>}]} {
    %c0 = arith.constant 0 : index
    %c0_0 = arith.constant 0 : index
    %0 = vector.load %arg1[%c0, %c0_0] : memref<8x16xf32, #tpu.memory_space<vmem>>, vector<8x16xf32>
    %c0_1 = arith.constant 0 : index
    %c0_2 = arith.constant 0 : index
    %1 = vector.load %arg2[%c0_1, %c0_2] : memref<16x32xf32, #tpu.memory_space<vmem>>, vector<16x32xf32>
    %c0_3 = arith.constant 0 : index
    %c0_4 = arith.constant 0 : index
    %2 = vector.load %arg3[%c0_3, %c0_4] : memref<1x32xf32, #tpu.memory_space<vmem>>, vector<1x32xf32>
    %c0_5 = arith.constant 0 : index
    %c0_6 = arith.constant 0 : index
    %3 = vector.load %arg4[%c0_5, %c0_6] : memref<1x32xf32, #tpu.memory_space<vmem>>, vector<1x32xf32>
    %c0_7 = arith.constant 0 : index
    %c0_8 = arith.constant 0 : index
    %4 = vector.load %arg5[%c0_7, %c0_8] : memref<1x32xf32, #tpu.memory_space<vmem>>, vector<1x32xf32>
    %cst = arith.constant dense<0.000000e+00> : vector<8x32xf32>
    %5 = tpu.matmul %0, %1, %cst {dimension_numbers = #tpu.dot_dimension_numbers<[1], [0], [0], [1], [0, 0, 1, 1], [], []>} : vector<8x16xf32>, vector<16x32xf32>, vector<8x32xf32> -> vector<8x32xf32>
    %6 = vector.broadcast %2 : vector<1x32xf32> to vector<8x32xf32>
    %7 = arith.addf %5, %6 : vector<8x32xf32>
    %8 = vector.broadcast %3 : vector<1x32xf32> to vector<8x32xf32>
    %9 = arith.mulf %7, %8 : vector<8x32xf32>
    %10 = vector.broadcast %4 : vector<1x32xf32> to vector<8x32xf32>
    %11 = arith.addf %9, %10 : vector<8x32xf32>
    %cst_9 = arith.constant 0.000000e+00 : f32
    %12 = vector.broadcast %cst_9 : f32 to vector<8x32xf32>
    %13 = arith.maximumf %11, %12 : vector<8x32xf32>
    %c0_10 = arith.constant 0 : index
    %c0_11 = arith.constant 0 : index
    %14 = vector.load %arg6[%c0_10, %c0_11] : memref<32x16xf32, #tpu.memory_space<vmem>>, vector<32x16xf32>
    %c0_12 = arith.constant 0 : index
    %c0_13 = arith.constant 0 : index
    %15 = vector.load %arg7[%c0_12, %c0_13] : memref<1x16xf32, #tpu.memory_space<vmem>>, vector<1x16xf32>
    %c0_14 = arith.constant 0 : index
    %c0_15 = arith.constant 0 : index
    %16 = vector.load %arg8[%c0_14, %c0_15] : memref<1x16xf32, #tpu.memory_space<vmem>>, vector<1x16xf32>
    %c0_16 = arith.constant 0 : index
    %c0_17 = arith.constant 0 : index
    %17 = vector.load %arg9[%c0_16, %c0_17] : memref<1x16xf32, #tpu.memory_space<vmem>>, vector<1x16xf32>
    %cst_18 = arith.constant dense<0.000000e+00> : vector<8x16xf32>
    %18 = tpu.matmul %13, %14, %cst_18 {dimension_numbers = #tpu.dot_dimension_numbers<[1], [0], [0], [1], [0, 0, 1, 1], [], []>} : vector<8x32xf32>, vector<32x16xf32>, vector<8x16xf32> -> vector<8x16xf32>
    %19 = vector.broadcast %15 : vector<1x16xf32> to vector<8x16xf32>
    %20 = arith.addf %18, %19 : vector<8x16xf32>
    %21 = vector.broadcast %16 : vector<1x16xf32> to vector<8x16xf32>
    %22 = arith.mulf %20, %21 : vector<8x16xf32>
    %23 = vector.broadcast %17 : vector<1x16xf32> to vector<8x16xf32>
    %24 = arith.addf %22, %23 : vector<8x16xf32>
    %cst_19 = arith.constant 0.000000e+00 : f32
    %25 = vector.broadcast %cst_19 : f32 to vector<8x16xf32>
    %26 = arith.maximumf %24, %25 : vector<8x16xf32>
    %c0_20 = arith.constant 0 : index
    %c0_21 = arith.constant 0 : index
    %27 = vector.load %arg10[%c0_20, %c0_21] : memref<16x1xf32, #tpu.memory_space<vmem>>, vector<16x1xf32>
    %c0_22 = arith.constant 0 : index
    %c0_23 = arith.constant 0 : index
    %28 = vector.load %arg11[%c0_22, %c0_23] : memref<1x1xf32, #tpu.memory_space<vmem>>, vector<1x1xf32>
    %cst_24 = arith.constant dense<0.000000e+00> : vector<8x1xf32>
    %29 = tpu.matmul %26, %27, %cst_24 {dimension_numbers = #tpu.dot_dimension_numbers<[1], [0], [0], [1], [0, 0, 1, 1], [], []>} : vector<8x16xf32>, vector<16x1xf32>, vector<8x1xf32> -> vector<8x1xf32>
    %30 = vector.broadcast %28 : vector<1x1xf32> to vector<8x1xf32>
    %31 = arith.addf %29, %30 : vector<8x1xf32>
    %c0_25 = arith.constant 0 : index
    %c0_26 = arith.constant 0 : index
    %32 = vector.load %arg12[%c0_25, %c0_26] : memref<8x1xf32, #tpu.memory_space<vmem>>, vector<8x1xf32>
    tpu.vector_store %arg12[%c0_25, %c0_26], %31 {strides = array<i32>} : memref<8x1xf32, #tpu.memory_space<vmem>>, vector<8x1xf32>,
    return
  }
  func.func @transform_0(%arg0: i32) -> (i32, i32) {
    %c0_i32 = arith.constant 0 : i32
    %c0_i32_0 = arith.constant 0 : i32
    return %arg0, %c0_i32 : i32, i32
  }
  func.func @transform_1(%arg0: i32) -> (i32, i32) {
    %c0_i32 = arith.constant 0 : i32
    %c0_i32_0 = arith.constant 0 : i32
    %c0_i32_1 = arith.constant 0 : i32
    return %c0_i32, %c0_i32_0 : i32, i32
  }
  func.func @transform_2(%arg0: i32) -> (i32, i32) {
    %c0_i32 = arith.constant 0 : i32
    %c0_i32_0 = arith.constant 0 : i32
    %c0_i32_1 = arith.constant 0 : i32
    return %c0_i32, %c0_i32_0 : i32, i32
  }
  func.func @transform_3(%arg0: i32) -> (i32, i32) {
    %c0_i32 = arith.constant 0 : i32
    %c0_i32_0 = arith.constant 0 : i32
    %c0_i32_1 = arith.constant 0 : i32
    return %c0_i32, %c0_i32_0 : i32, i32
  }
  func.func @transform_4(%arg0: i32) -> (i32, i32) {
    %c0_i32 = arith.constant 0 : i32
    %c0_i32_0 = arith.constant 0 : i32
    %c0_i32_1 = arith.constant 0 : i32
    return %c0_i32, %c0_i32_0 : i32, i32
  }
  func.func @transform_5(%arg0: i32) -> (i32, i32) {
    %c0_i32 = arith.constant 0 : i32
    %c0_i32_0 = arith.constant 0 : i32
    %c0_i32_1 = arith.constant 0 : i32
    return %c0_i32, %c0_i32_0 : i32, i32
  }
  func.func @transform_6(%arg0: i32) -> (i32, i32) {
    %c0_i32 = arith.constant 0 : i32
    %c0_i32_0 = arith.constant 0 : i32
    %c0_i32_1 = arith.constant 0 : i32
    return %c0_i32, %c0_i32_0 : i32, i32
  }
  func.func @transform_7(%arg0: i32) -> (i32, i32) {
    %c0_i32 = arith.constant 0 : i32
    %c0_i32_0 = arith.constant 0 : i32
    %c0_i32_1 = arith.constant 0 : i32
    return %c0_i32, %c0_i32_0 : i32, i32
  }
  func.func @transform_8(%arg0: i32) -> (i32, i32) {
    %c0_i32 = arith.constant 0 : i32
    %c0_i32_0 = arith.constant 0 : i32
    %c0_i32_1 = arith.constant 0 : i32
    return %c0_i32, %c0_i32_0 : i32, i32
  }
  func.func @transform_9(%arg0: i32) -> (i32, i32) {
    %c0_i32 = arith.constant 0 : i32
    %c0_i32_0 = arith.constant 0 : i32
    %c0_i32_1 = arith.constant 0 : i32
    return %c0_i32, %c0_i32_0 : i32, i32
  }
  func.func @transform_10(%arg0: i32) -> (i32, i32) {
    %c0_i32 = arith.constant 0 : i32
    %c0_i32_0 = arith.constant 0 : i32
    %c0_i32_1 = arith.constant 0 : i32
    return %c0_i32, %c0_i32_0 : i32, i32
  }
  func.func @transform_11(%arg0: i32) -> (i32, i32) {
    %c0_i32 = arith.constant 0 : i32
    %c0_i32_0 = arith.constant 0 : i32
    return %arg0, %c0_i32 : i32, i32
  }
}

</mosaic_0001>

<bundles_post_ra>
// kernel: tpu_custom_call.1
= control target key start
LH: loop header
LB: loop body
LE: loop exit
PB: predicated region body
PF: predicated region fallthrough
CT: control target
= control target key end

     0   :  { %vm49_vm0 = vcmask 130048   ;;  %vm92_vm1 = vcmask 261120   ;;  %vm154_vm2 = vcmask 7168   ;;  %s283_s1 = inlined_call_operand.vmem [shape: f32[16,32], index: 1, kind: input, shape index: {}]   ;;  %s284_s0 = inlined_call_operand.vmem [shape: f32[8,16], index: 0, kind: input, shape index: {}]   ;;  %s285_s2 = inlined_call_operand.vmem [shape: f32[1,32], index: 2, kind: input, shape index: {}]   ;;  %s286_s3 = inlined_call_operand.vmem [shape: f32[1,32], index: 3, kind: input, shape index: {}]   ;;  %s287_s4 = inlined_call_operand.vmem [shape: f32[1,32], index: 4, kind: input, shape index: {}]   ;;  %s288_s6 = inlined_call_operand.vmem [shape: f32[1,16], index: 6, kind: input, shape index: {}]   ;;  %s289_s7 = inlined_call_operand.vmem [shape: f32[1,16], index: 7, kind: input, shape index: {}]   ;;  %s290_s5 = inlined_call_operand.vmem [shape: f32[32,16], index: 5, kind: input, shape index: {}]   ;;  %s291_s8 = inlined_call_operand.vmem [shape: f32[1,16], index: 8, kind: input, shape index: {}]   ;;  %s292_s9 = inlined_call_operand.vmem [shape: f32[16,1], index: 9, kind: input, shape index: {}]   ;;  %s293_s10 = inlined_call_operand.<no memory space> [shape: f32[1,1], index: 10, kind: input, shape index: {}]   ;;  %s294_s11 = inlined_call_operand.vmem [shape: f32[8,1], index: 11, kind: output, shape index: {}]  }
   0x1   :  { %v42_v0 = vld [vmem:[%s283_s1 + $0x8] sm:$0xff]  ;;  %v41_v1 = vld [vmem:[%s283_s1] sm:$0xff]  ;;  %v85_v3 = vld [vmem:[%s290_s5 + $0x18] sm:$0xff]  ;;  %v16_v17 = vstv %s293_s10 }
   0x2   :  { %67 = vmatpush.msra.mxu0 %v42_v0  ;;  %v40_v2 = vld [vmem:[%s284_s0] sm:$0xff]  ;;  %108 = vmatpush.msra.mxu1 %v85_v3  ;;  %v84_v4 = vld [vmem:[%s290_s5 + $0x10] sm:$0xff]  ;;  %v83_v5 = vld [vmem:[%s290_s5 + $0x8] sm:$0xff]  ;;  %17 = vst [vmem:[#allocation2] sm:$0x1] %v16_v17 }
   0x3   :  { %v82_v6 = vld [vmem:[%s290_s5] sm:$0xff]  ;;  %v126_v15 = vld [vmem:[%s292_s9 + $0x8] sm:$0xff] }
   0x4   :  { %68 = vmatpush.msra.mxu0 %v41_v1  ;;  %109 = vmatpush.msra.mxu1 %v84_v4  ;;  %v163_v7 = vld [vmem:[%s285_s2] ss:$0 sm:$0xff] }
   0x5   :  { %160 = vmatmul.msk.f32.vlgmr.msra.gmra.mxu0 %vm49_vm0, %v40_v2  ;;  %v164_v8 = vld [vmem:[%s286_s3] ss:$0 sm:$0xff]  ;;  %148 = vmatpush.msra.mxu2 %v126_v15 }
   0x6   :  { %110 = vmatpush.msra.mxu1 %v83_v5  ;;  %v165_v11 = vld [vmem:[%s287_s4] ss:$0 sm:$0xff] }
   0x7   :  { %v125_v16 = vld [vmem:[%s292_s9] sm:$0xff] }
   0x8   :  { %111 = vmatpush.msra.mxu1 %v82_v6  ;;  %149 = vmatpush.msra.mxu2 %v125_v16  ;;  %v166_v18 = vld [vmem:[%s288_s6] ss:$0 sm:$0xff] }
   0x9   :  { %v167_v19 = vld [vmem:[%s289_s7] ss:$0 sm:$0xff] }
   0xa   :  { %v168_v22 = vld [vmem:[%s291_s8] ss:$0 sm:$0xff] }
   0xb   :  { %v169_v26 = vld [vmem:[#allocation2] ss:$0 sm:$0xff] }
  0x82   :  { %v70_v9 = vpop.f32.mrf.mxu0 }
  0x83   :  { %v71_v10 = vadd.f32 %v163_v7, %v70_v9 }
  0x85   :  { %v76_v12 = vmul.f32 %v164_v8, %v71_v10 }
  0x87   :  { %v80_v13 = vadd.f32 %v165_v11, %v76_v12 }
  0x89   :  { %v81_v14 = vmax.f32 %v80_v13, 0.0 }
  0x8b   :  { %161 = vmatmul.msk.f32.vlgmr.msra.gmra.mxu1 %vm92_vm1, %v81_v14 }
 0x108   :  { %v113_v20 = vpop.f32.mrf.mxu1 }
 0x109   :  { %v114_v21 = vadd.f32 %v166_v18, %v113_v20 }
 0x10b   :  { %v119_v23 = vmul.f32 %v167_v19, %v114_v21 }
 0x10d   :  { %v123_v24 = vadd.f32 %v168_v22, %v119_v23 }
 0x10f   :  { %v124_v25 = vmax.f32 %v123_v24, 0.0 }
 0x111   :  { %162 = vmatmul.msk.f32.vlgmr.msra.gmra.mxu2 %vm49_vm0, %v124_v25 }
 0x194   :  { %v151_v27 = vpop.f32.mrf.mxu2 }
 0x195   :  { %v152_v28 = vadd.f32 %v169_v26, %v151_v27 }
 0x197   :  { %155 = vst.msk [vmem:[%s294_s11] sm:$0xff] %vm154_vm2, %v152_v28 }

</bundles_post_ra>
